<compile_context>
chip_gen: v6e
topology: v6e:2x2x1
jax: 0.10.0
libtpu: 0.0.40
codegen_flags: <defaults>
</compile_context>

<pallas_src>
import math

import jax
import jax.numpy as jnp
from jax.experimental import pallas as pl
from jax.experimental.pallas import tpu as pltpu

IN_F = 16
HID = 64
OUT_F = 13


def _round_up(n, m):
    return ((n + m - 1) // m) * m


# ----------------------------------------------------------------------------
# Kernel
# ----------------------------------------------------------------------------
def _mlp_kernel(x_ref,
                w1_ref, b1_ref,
                w2_ref, b2_ref,
                w3_ref, b3_ref,
                o_ref):
    # f32 -> bf16 cast on the VPU (free in the VALU slot; avoids a separate
    # wrapper-side cast pass over HBM).
    x = x_ref[...].astype(jnp.bfloat16)                          # [TB, 16]

    # Layer 1: Linear(16,64) with BN folded in; f32 accumulate + f32 epilogue.
    h1 = jnp.dot(x, w1_ref[...], preferred_element_type=jnp.float32) + b1_ref[...]
    h1 = jnp.maximum(h1, 0.0)                                    # ReLU (Dropout = id)

    # Layer 2: Linear(64,64) with BN folded in.
    h2 = jnp.dot(h1.astype(jnp.bfloat16), w2_ref[...],
                 preferred_element_type=jnp.float32) + b2_ref[...]
    h2 = jnp.maximum(h2, 0.0)

    # Layer 3: Linear(64,13) + Sigmoid.  Exact divide (kernel is HBM-bound so
    # it costs nothing); exp(-x) -> inf for very negative x yields 1/(1+inf)=0.
    logits = jnp.dot(h2.astype(jnp.bfloat16), w3_ref[...],
                     preferred_element_type=jnp.float32) + b3_ref[...]
    o_ref[...] = 1.0 / (1.0 + jnp.exp(-logits))


# ----------------------------------------------------------------------------
# Wrapper
# ----------------------------------------------------------------------------
def simple_nn_forward(x, folded_params, *, tb=4096):
    """x: [B, 16] float32 -> [B, 13] float32 (eval-mode forward pass)."""
    w1, b1, w2, b2, w3, b3 = folded_params
    B = x.shape[0]

    # Batch tile: multiple of 8 (sublane); >= 2 grid steps whenever B > 8 so a
    # v7x megacore gets work on both TensorCores; capped at `tb` so two
    # double-buffered (TB, 128-lane-padded) tiles stay well under VMEM limits.
    TB = max(8, min(tb, _round_up(pl.cdiv(B, 2), 8)))
    grid = (pl.cdiv(B, TB),)

    weight_bytes = sum(int(a.size) * a.dtype.itemsize
                       for a in (w1, b1, w2, b2, w3, b3))
    cost = pl.CostEstimate(
        flops=2 * B * (IN_F * HID + HID * HID + HID * OUT_F),
        transcendentals=B * OUT_F,
        bytes_accessed=B * (IN_F + OUT_F) * 4 + weight_bytes,
    )

    resident = lambda arr: pl.BlockSpec(arr.shape, lambda i: (0, 0))

    return pl.pallas_call(
        _mlp_kernel,
        out_shape=jax.ShapeDtypeStruct((B, OUT_F), jnp.float32),
        grid=grid,
        in_specs=[
            pl.BlockSpec((TB, IN_F), lambda i: (i, 0)),   # x: tiled over batch
            resident(w1), resident(b1),                   # weights stay in VMEM
            resident(w2), resident(b2),
            resident(w3), resident(b3),
        ],
        out_specs=pl.BlockSpec((TB, OUT_F), lambda i: (i, 0)),
        compiler_params=pltpu.CompilerParams(
            dimension_semantics=("parallel",),            # megacore on v7x
        ),
        cost_estimate=cost,
    )(x, w1, b1, w2, b2, w3, b3)


# ----------------------------------------------------------------------------
# Parameter construction (PyTorch-like init) and folding
# ----------------------------------------------------------------------------
def _linear_init(key, fan_in, fan_out):
    """PyTorch nn.Linear default init: U(-1/sqrt(fan_in), 1/sqrt(fan_in))."""
    kw, kb = jax.random.split(key)
    bound = 1.0 / math.sqrt(fan_in)
    w = jax.random.uniform(kw, (fan_in, fan_out), jnp.float32, -bound, bound)
    b = jax.random.uniform(kb, (1, fan_out), jnp.float32, -bound, bound)
    return w, b


def _bn_affine(key, num_features, eps=1e-5):
    """Non-trivial BN running-stats params as a per-feature (scale, shift)."""
    k1, k2, k3, k4 = jax.random.split(key, 4)
    gamma = 1.0 + 0.1 * jax.random.normal(k1, (1, num_features), jnp.float32)
    beta = 0.1 * jax.random.normal(k2, (1, num_features), jnp.float32)
    running_mean = 0.1 * jax.random.normal(k3, (1, num_features), jnp.float32)
    running_var = 1.0 + 0.1 * jax.random.uniform(k4, (1, num_features), jnp.float32)
    inv_std = 1.0 / jnp.sqrt(running_var + eps)
    scale = gamma * inv_std
    shift = beta - running_mean * scale
    return scale, shift


def make_raw_params(seed=0):
    key = jax.random.PRNGKey(seed)
    k1, k2, k3, k4, k5 = jax.random.split(key, 5)
    w1, b1 = _linear_init(k1, IN_F, HID)
    s1, t1 = _bn_affine(k2, HID)
    w2, b2 = _linear_init(k3, HID, HID)
    s2, t2 = _bn_affine(k4, HID)
    w3, b3 = _linear_init(k5, HID, OUT_F)
    return (w1, b1, s1, t1, w2, b2, s2, t2, w3, b3)


def fold_params(raw):
    """Fold BN affine into W/b and cast weights to bf16 (biases stay f32)."""
    (w1, b1, s1, t1, w2, b2, s2, t2, w3, b3) = raw
    # (xW + b) * s + t  ==  x (W*s) + (b*s + t)   (s, t broadcast over columns)
    w1f = (w1 * s1).astype(jnp.bfloat16)
    b1f = (b1 * s1 + t1).astype(jnp.float32)
    w2f = (w2 * s2).astype(jnp.bfloat16)
    b2f = (b2 * s2 + t2).astype(jnp.float32)
    w3f = w3.astype(jnp.bfloat16)
    b3f = b3.astype(jnp.float32)
    return (w1f, b1f, w2f, b2f, w3f, b3f)


def simple_nn_reference(x, raw):
    """Pure-JAX f32 reference of the PyTorch eval-mode forward (Dropout = id)."""
    (w1, b1, s1, t1, w2, b2, s2, t2, w3, b3) = raw
    h = jnp.maximum((x @ w1 + b1) * s1 + t1, 0.0)
    h = jnp.maximum((h @ w2 + b2) * s2 + t2, 0.0)
    return jax.nn.sigmoid(h @ w3 + b3)


if __name__ == "__main__":
    key = jax.random.PRNGKey(0)
    # Small batch, deliberately NOT a multiple of the tile size -> exercises
    # the masked partial-tile writeback path (2 grid steps, last one partial).
    B = 11
    x = jax.random.normal(key, (B, IN_F), jnp.float32)

    raw = make_raw_params(seed=0)
    params = fold_params(raw)

    out = simple_nn_forward(x, params)
    out = jax.block_until_ready(out)

    assert out.shape == (B, OUT_F), out.shape
    assert out.dtype == jnp.float32
    # sigmoid output range
    assert bool(jnp.all((out >= 0.0) & (out <= 1.0)))

    # numerical check vs f32 reference (bf16 weights -> modest tolerance)
    ref = simple_nn_reference(x, raw)
    err = float(jnp.max(jnp.abs(out - ref)))
    assert err < 2e-2, err

    print("KERNEL_OK")
</pallas_src>

<mosaic_0001>
module attributes {stable_mosaic.version = 11 : i64} {
  func.func @_mlp_kernel(%arg0: i32, %arg1: memref<8x16xf32, #tpu.memory_space<vmem>>, %arg2: memref<16x64xbf16, #tpu.memory_space<vmem>>, %arg3: memref<1x64xf32, #tpu.memory_space<vmem>>, %arg4: memref<64x64xbf16, #tpu.memory_space<vmem>>, %arg5: memref<1x64xf32, #tpu.memory_space<vmem>>, %arg6: memref<64x13xbf16, #tpu.memory_space<vmem>>, %arg7: memref<1x13xf32, #tpu.memory_space<vmem>>, %arg8: memref<8x13xf32, #tpu.memory_space<vmem>>) attributes {dimension_semantics = [#tpu.dimension_semantics<parallel>], iteration_bounds = array<i64: 2>, scalar_prefetch = 0 : i64, scratch_operands = 0 : i64, tpu.core_type = #tpu.core_type<tc>, window_params = [{transform_indices = @transform_0, window_bounds = array<i64: 8, 16>}, {pipeline_mode = #tpu.pipeline_mode<synchronous>, transform_indices = @transform_1, window_bounds = array<i64: 16, 64>}, {pipeline_mode = #tpu.pipeline_mode<synchronous>, transform_indices = @transform_2, window_bounds = array<i64: 1, 64>}, {pipeline_mode = #tpu.pipeline_mode<synchronous>, transform_indices = @transform_3, window_bounds = array<i64: 64, 64>}, {pipeline_mode = #tpu.pipeline_mode<synchronous>, transform_indices = @transform_4, window_bounds = array<i64: 1, 64>}, {pipeline_mode = #tpu.pipeline_mode<synchronous>, transform_indices = @transform_5, window_bounds = array<i64: 64, 13>}, {pipeline_mode = #tpu.pipeline_mode<synchronous>, transform_indices = @transform_6, window_bounds = array<i64: 1, 13>}, {transform_indices = @transform_7, window_bounds = array<i64: 8, 13>}]} {
    %c0 = arith.constant 0 : index
    %c0_0 = arith.constant 0 : index
    %0 = vector.load %arg1[%c0, %c0_0] : memref<8x16xf32, #tpu.memory_space<vmem>>, vector<8x16xf32>
    %1 = arith.truncf %0 : vector<8x16xf32> to vector<8x16xbf16>
    %c0_1 = arith.constant 0 : index
    %c0_2 = arith.constant 0 : index
    %2 = vector.load %arg2[%c0_1, %c0_2] : memref<16x64xbf16, #tpu.memory_space<vmem>>, vector<16x64xbf16>
    %cst = arith.constant dense<0.000000e+00> : vector<8x64xf32>
    %3 = tpu.matmul %1, %2, %cst {dimension_numbers = #tpu.dot_dimension_numbers<[1], [0], [0], [1], [0, 0, 1, 1], [], []>} : vector<8x16xbf16>, vector<16x64xbf16>, vector<8x64xf32> -> vector<8x64xf32>
    %c0_3 = arith.constant 0 : index
    %c0_4 = arith.constant 0 : index
    %4 = vector.load %arg3[%c0_3, %c0_4] : memref<1x64xf32, #tpu.memory_space<vmem>>, vector<1x64xf32>
    %5 = vector.broadcast %4 : vector<1x64xf32> to vector<8x64xf32>
    %6 = arith.addf %3, %5 : vector<8x64xf32>
    %cst_5 = arith.constant 0.000000e+00 : f32
    %7 = vector.broadcast %cst_5 : f32 to vector<8x64xf32>
    %8 = arith.maximumf %6, %7 : vector<8x64xf32>
    %9 = arith.truncf %8 : vector<8x64xf32> to vector<8x64xbf16>
    %c0_6 = arith.constant 0 : index
    %c0_7 = arith.constant 0 : index
    %10 = vector.load %arg4[%c0_6, %c0_7] : memref<64x64xbf16, #tpu.memory_space<vmem>>, vector<64x64xbf16>
    %cst_8 = arith.constant dense<0.000000e+00> : vector<8x64xf32>
    %11 = tpu.matmul %9, %10, %cst_8 {dimension_numbers = #tpu.dot_dimension_numbers<[1], [0], [0], [1], [0, 0, 1, 1], [], []>} : vector<8x64xbf16>, vector<64x64xbf16>, vector<8x64xf32> -> vector<8x64xf32>
    %c0_9 = arith.constant 0 : index
    %c0_10 = arith.constant 0 : index
    %12 = vector.load %arg5[%c0_9, %c0_10] : memref<1x64xf32, #tpu.memory_space<vmem>>, vector<1x64xf32>
    %13 = vector.broadcast %12 : vector<1x64xf32> to vector<8x64xf32>
    %14 = arith.addf %11, %13 : vector<8x64xf32>
    %cst_11 = arith.constant 0.000000e+00 : f32
    %15 = vector.broadcast %cst_11 : f32 to vector<8x64xf32>
    %16 = arith.maximumf %14, %15 : vector<8x64xf32>
    %17 = arith.truncf %16 : vector<8x64xf32> to vector<8x64xbf16>
    %c0_12 = arith.constant 0 : index
    %c0_13 = arith.constant 0 : index
    %18 = vector.load %arg6[%c0_12, %c0_13] : memref<64x13xbf16, #tpu.memory_space<vmem>>, vector<64x13xbf16>
    %cst_14 = arith.constant dense<0.000000e+00> : vector<8x13xf32>
    %19 = tpu.matmul %17, %18, %cst_14 {dimension_numbers = #tpu.dot_dimension_numbers<[1], [0], [0], [1], [0, 0, 1, 1], [], []>} : vector<8x64xbf16>, vector<64x13xbf16>, vector<8x13xf32> -> vector<8x13xf32>
    %c0_15 = arith.constant 0 : index
    %c0_16 = arith.constant 0 : index
    %20 = vector.load %arg7[%c0_15, %c0_16] : memref<1x13xf32, #tpu.memory_space<vmem>>, vector<1x13xf32>
    %21 = vector.broadcast %20 : vector<1x13xf32> to vector<8x13xf32>
    %22 = arith.addf %19, %21 : vector<8x13xf32>
    %cst_17 = arith.constant 0.000000e+00 : f32
    %23 = vector.broadcast %cst_17 : f32 to vector<8x13xf32>
    %24 = arith.subf %23, %22 : vector<8x13xf32>
    %25 = math.exp %24 : vector<8x13xf32>
    %cst_18 = arith.constant 1.000000e+00 : f32
    %26 = vector.broadcast %cst_18 : f32 to vector<8x13xf32>
    %27 = arith.addf %26, %25 : vector<8x13xf32>
    %cst_19 = arith.constant 1.000000e+00 : f32
    %28 = vector.broadcast %cst_19 : f32 to vector<8x13xf32>
    %29 = arith.divf %28, %27 : vector<8x13xf32>
    %c0_20 = arith.constant 0 : index
    %c0_21 = arith.constant 0 : index
    %30 = vector.load %arg8[%c0_20, %c0_21] : memref<8x13xf32, #tpu.memory_space<vmem>>, vector<8x13xf32>
    tpu.vector_store %arg8[%c0_20, %c0_21], %29 {strides = array<i32>} : memref<8x13xf32, #tpu.memory_space<vmem>>, vector<8x13xf32>,
    return
  }
  func.func @transform_0(%arg0: i32) -> (i32, i32) {
    %c0_i32 = arith.constant 0 : i32
    %c0_i32_0 = arith.constant 0 : i32
    return %arg0, %c0_i32 : i32, i32
  }
  func.func @transform_1(%arg0: i32) -> (i32, i32) {
    %c0_i32 = arith.constant 0 : i32
    %c0_i32_0 = arith.constant 0 : i32
    %c0_i32_1 = arith.constant 0 : i32
    return %c0_i32, %c0_i32_0 : i32, i32
  }
  func.func @transform_2(%arg0: i32) -> (i32, i32) {
    %c0_i32 = arith.constant 0 : i32
    %c0_i32_0 = arith.constant 0 : i32
    %c0_i32_1 = arith.constant 0 : i32
    return %c0_i32, %c0_i32_0 : i32, i32
  }
  func.func @transform_3(%arg0: i32) -> (i32, i32) {
    %c0_i32 = arith.constant 0 : i32
    %c0_i32_0 = arith.constant 0 : i32
    %c0_i32_1 = arith.constant 0 : i32
    return %c0_i32, %c0_i32_0 : i32, i32
  }
  func.func @transform_4(%arg0: i32) -> (i32, i32) {
    %c0_i32 = arith.constant 0 : i32
    %c0_i32_0 = arith.constant 0 : i32
    %c0_i32_1 = arith.constant 0 : i32
    return %c0_i32, %c0_i32_0 : i32, i32
  }
  func.func @transform_5(%arg0: i32) -> (i32, i32) {
    %c0_i32 = arith.constant 0 : i32
    %c0_i32_0 = arith.constant 0 : i32
    %c0_i32_1 = arith.constant 0 : i32
    return %c0_i32, %c0_i32_0 : i32, i32
  }
  func.func @transform_6(%arg0: i32) -> (i32, i32) {
    %c0_i32 = arith.constant 0 : i32
    %c0_i32_0 = arith.constant 0 : i32
    %c0_i32_1 = arith.constant 0 : i32
    return %c0_i32, %c0_i32_0 : i32, i32
  }
  func.func @transform_7(%arg0: i32) -> (i32, i32) {
    %c0_i32 = arith.constant 0 : i32
    %c0_i32_0 = arith.constant 0 : i32
    return %arg0, %c0_i32 : i32, i32
  }
}

</mosaic_0001>

<bundles_post_ra>
// kernel: tpu_custom_call.1
= control target key start
LH: loop header
LB: loop body
LE: loop exit
PB: predicated region body
PF: predicated region fallthrough
CT: control target
= control target key end

     0   :  { %s1163_s0 = inlined_call_operand.hbm [shape: f32[11,16], index: 0, kind: input, shape index: {}]   ;;  %s1164_s1 = inlined_call_operand.vmem [shape: bf16[16,64], index: 1, kind: input, shape index: {}]   ;;  %s1165_s2 = inlined_call_operand.vmem [shape: f32[1,64], index: 2, kind: input, shape index: {}]   ;;  %s1166_s3 = inlined_call_operand.vmem [shape: bf16[64,64], index: 3, kind: input, shape index: {}]   ;;  %s1167_s4 = inlined_call_operand.hbm [shape: f32[1,64], index: 4, kind: input, shape index: {}]   ;;  %s1168_s5 = inlined_call_operand.vmem [shape: bf16[64,13], index: 5, kind: input, shape index: {}]   ;;  %s1169_s6 = inlined_call_operand.vmem [shape: f32[1,13], index: 6, kind: input, shape index: {}]   ;;  %s1170_s7 = inlined_call_operand.hbm [shape: f32[11,13], index: 7, kind: output, shape index: {}]  }
   0x1   :  { %1175 = sst [smem:[#allocation12_spill]] %s1167_s4 }
   0x2   :  { %12 = vsyncpa [#allocation3], 0 }
   0x3   :  { %14 = vsyncpa [#allocation3 + $0x1], 0 }
   0x4   :  { %15 = vsyncpa [#allocation6], 0 }
   0x5   :  { %16 = vsyncpa [#allocation4], 0 }
   0x6   :  { %18 = vsyncpa [#allocation4 + $0x1], 0  ;;  %s952_s24 = smov 0   ;;  %s954_s25 = smov 0  }
   0x7   :  { %s956_s26 = smov 0   ;;  %s958_s27 = smov 0  }
   0x8 LB: > { %s973_s28 = sadd.s32 4294967295, %s905_s27   ;;  %s640_s29 = sadd.s32 4294967294, %s905_s27   ;;  %s905_s27 = sphi %s958_s27, %s1197_s27   ;;  %s901_s26 = sphi %s956_s26, %s1196_s26   ;;  %s897_s25 = sphi %s954_s25, %s1195_s25   ;;  %s893_s24 = sphi %s952_s24, %s1194_s24  }
   0x9   : > { %p44_p0 = scmp.ne.s32.totalorder %s897_s25, %s893_s24  ;;  %p1171_p1 = scmp.eq.s32.totalorder %s973_s28, 0 }
   0xa   : > { %p200_p3 = scmp.eq.s32.totalorder %s640_s29, 1  ;;  %p641_p5 = scmp.ge.s32.totalorder %s905_s27, 1 }
   0xb   : > { %p982_p4 = por %p1171_p1, %p44_p0  ;;  %p207_p7 = scmp.lt.s32.totalorder %s905_s27, 3 }
   0xc   : > { %p987_p6 = por %p200_p3, %p44_p0  ;;  %s907_s10 = smov [#allocation5]  }
   0xd   : > { %s1176_s30 = scalar_select %p982_p4, 1, 0 }
   0xe   : > { %s1177_s8 = scalar_select %p987_p6, 1, 0 }
   0xf   : > { %p992_p8 = pnand %p641_p5, %p207_p7  ;;  %s229_s11 = sshll.u32 %s907_s10, 4  ;;  %s230_s11 = int_to_ptr.vmem [resolvable:$true] %s229_s11 }
  0x10   : > { %s1000_s12 = sadd.s32 1, %s905_s27   ;;  %s31_s16 = sadd.s32 1, %s901_s26 }
  0x11   : > { %s1178_s9 = scalar_select %p992_p8, 1, 0 }
  0x12   : > { %p719_p10 = pneg %p992_p8  ;;  %s28_s14 = ssub.s32 %s905_s27, %s1000_s12 }
  0x13   : > { %p1010_p12 = scmp.eq.s32.totalorder %s28_s14, 0  ;;  %p38_p13 = scmp.ne.s32.totalorder %s901_s26, %s897_s25 }
  0x14   : > { %p1004_p11 = pnand %p719_p10, %p1171_p1  ;;  %s794_s17 = scalar_lea.vmem %s230_s11, 16 }
  0x15   : > { %p795_p3 = scmp.ne.s32.totalorder %s230_s11, %s794_s17  ;;  %s801_s18 = scalar_lea.vmem %s230_s11, 32 }
  0x16   : > { %p785_p0 = pneg %p1004_p11  ;;  %p802_p9 = scmp.lt.s32.totalorder %s230_s11, %s230_s11 }
  0x17   : > { %p803_p10 = scmp.lt.s32.totalorder %s801_s18, %s794_s17 }
  0x18   : > { %p797_p5 = pnand %p795_p3, %p785_p0 }
  0x19   : > { %p804_p1 = por %p803_p10, %p802_p9 }
  0x1a   : > { %p798_p7 = pneg %p797_p5 }
  0x1c   : > { %p805_p2 = pnand %p804_p1, %p798_p7 }
  0x1e   : > { %808 = shalt.err (!%p805_p2)
}
  0x1f   : > { %s1181_s4 = sld [smem:[#allocation12_spill]]  ;;  %p39_p1 = scmp.eq.s32.totalorder %s905_s27, 0 }
  0x20   : > { %s1027_s21 = scalar_select %p1010_p12, %s901_s26, %s31_s16  }
  0x21   : > { %p1183_p2 = scmp.eq.s32.totalorder %s973_s28, 1  ;;  %p732_p0 = scmp.lt.s32.totalorder %s905_s27, 2 }
  0x22   : > { %1182 = sst [smem:[#allocation11_spill]] %s1027_s21  ;;  %s246_s23 = sand.u32 1, %s901_s26  }
  0x23   : > { %p1035_p9 = por %p1183_p2, %p38_p13  ;;  %p40_p3 = por %p39_p1, %p38_p13 }
  0x24   : > { %s644_s29 = sshll.u32 %s246_s23, 3  ;;  %s645_s10 = sshll.u32 %s905_s27, 7 }
  0x25   : > { %722 = dma.hbm_to_vmem [thread:$0]  (!%p1004_p11), %s1181_s4, 16, %s230_s11, [#allocation6]  }
  0x26   : > { %s1184_s22 = scalar_select %p1035_p9, 1, 0 }
  0x27   : > { %s1048_s11 = scalar_lea.hbm %s1163_s0, %s645_s10  ;;  %s250_s15 = scalar_lea.vmem [#allocation2], %s644_s29 }
  0x28   : > { %s257_s16 = sshll.u32 %s250_s15, 4  ;;  %p1050_p11 = pnand %p732_p0, %p40_p3  ;;  %s258_s16 = int_to_ptr.vmem [resolvable:$true] %s257_s16 }
  0x29   : > { %s247_s18 = scalar_lea.sflag [#allocation3], %s246_s23  ;;  %s809_s19 = scalar_lea.hbm %s1048_s11, 128 }
  0x2a   : > { %p810_p12 = scmp.ne.s32.totalorder %s1048_s11, %s809_s19  ;;  %p811_p13 = pneg %p1050_p11 }
  0x2b   : > { %s814_s13 = scalar_lea.hbm %s1163_s0, 256  ;;  %p815_p10 = scmp.lt.s32.totalorder %s1048_s11, %s1163_s0 }
  0x2c   : > { %p812_p5 = pnand %p811_p13, %p810_p12  ;;  %p816_p1 = scmp.lt.s32.totalorder %s814_s13, %s809_s19 }
  0x2e   : > { %p813_p7 = pneg %p812_p5  ;;  %p817_p2 = por %p816_p1, %p815_p10 }
  0x30   : > { %p818_p0 = pnand %p817_p2, %p813_p7 }
  0x32   : > { %821 = shalt.err (!%p818_p0)
}
  0x33   : > { %s822_s15 = scalar_lea.vmem %s258_s16, 128  ;;  %s908_s23 = smov [#allocation2]  }
  0x34   : > { %p823_p3 = scmp.ne.s32.totalorder %s258_s16, %s822_s15  ;;  %s827_s4 = sshll.u32 %s908_s23, 4  ;;  %s828_s4 = int_to_ptr.vmem [resolvable:$false] %s827_s4 }
  0x35   : > { %s829_s21 = scalar_lea.vmem %s828_s4, 256  ;;  %p830_p12 = scmp.lt.s32.totalorder %s258_s16, %s828_s4 }
  0x36   : > { %p825_p6 = pnand %p823_p3, %p811_p13  ;;  %p831_p5 = scmp.lt.s32.totalorder %s829_s21, %s822_s15 }
  0x38   : > { %p826_p9 = pneg %p825_p6  ;;  %p832_p4 = por %p831_p5, %p830_p12 }
  0x3a   : > { %p833_p8 = pnand %p832_p4, %p826_p9 }
  0x3c   : > { %836 = shalt.err (!%p833_p8)
}
  0x3d   : > { %726 = dma.hbm_to_vmem [thread:$0]  (!%p1050_p11), %s1048_s11, 128, %s258_s16, %s247_s18  }
  0x3e   : > { %p1186_p7 = scmp.ne.s32.totalorder %s1178_s9, 0 }
  0x3f   : > { %s1071_s19 = sand.u32 (!%p1186_p7), 1, %s897_s25   ;;  %p1187_p4 = scmp.ne.s32.totalorder (!%p1186_p7), %s1176_s30, 0 }
  0x40   : > { %266 = sbr.rel (%p1186_p7) target bundleno = 719 (0x2cf), region = 48  ;;  %s647_s20 = sshll.u32 (!%p1186_p7), %s1071_s19, 3 }
  0x41   : > { %s269_s4 = scalar_lea.sflag (!%p1186_p7), [#allocation3], %s1071_s19  ;;  %s272_s21 = scalar_lea.vmem (!%p1186_p7), [#allocation2], %s647_s20 }
  0x45   : > { %880 = dma.done.wait (%p1187_p4), %s269_s4, 128  }
  0x46   : > { %882 = vsyncadd (%p1187_p4), %s269_s4, 4294967168  ;;  %p1188_p6 = scmp.eq.s32.totalorder %s973_s28, 0 }
  0x48   : > { %884 = dma.done.wait (%p1188_p6), [#allocation6], 16   ;;  %p1189_p8 = pmov %p1188_p6 }
  0x49   : > { %v909_v0 = vmov 0.0   ;;  %vm910_vm0 = vmmov 0   ;;  %v770_v1 = vld [vmem:[%s1164_s1] sm:$0xff]   ;;  %vm325_vm1 = vcmask 130048   ;;  %v771_v4 = vld [vmem:[%s1166_s3 + $0x18] sm:$0xff]   ;;  %v772_v5 = vld [vmem:[%s1166_s3 + $0x10] sm:$0xff]  }
  0x4a   : > { %886 = vsyncadd (%p1189_p8), [#allocation6], 4294967280  ;;  %681 = vmatprep.subr.bf16.mxu0 %v909_v0  ;;  %683 = vmatprep.mubr.msk.bf16.mxu0 %vm910_vm0, %v909_v0  ;;  %v308_v2 = vld [vmem:[%s272_s21] sm:$0xff]  ;;  %v775_v8 = vld [vmem:[%s1168_s5 + $0x18] sm:$0xff]   ;;  %vm410_vm2 = vcmask 523264   ;;  %s666_s14 = sshll.u32 %s973_s28, 7 }
  0x4b   : > { %687 = vmatprep.subr.bf16.mxu1 %v909_v0  ;;  %695 = vmatprep.mubr.msk.bf16.mxu1 %vm910_vm0, %v909_v0  ;;  %v309_v3 = vpack.c.bf16 %v308_v2, %v308_v2  ;;  %v773_v6 = vld [vmem:[%s1166_s3 + $0x8] sm:$0xff]   ;;  %v774_v7 = vld [vmem:[%s1166_s3] sm:$0xff]   ;;  %v776_v9 = vld [vmem:[%s1168_s5 + $0x10] sm:$0xff]   ;;  %s306_s29 = scalar_lea.vmem [#allocation7], %s647_s20  ;;  %vm544_vm3 = vcmask 105472   ;;  %s1126_s21 = scalar_lea.hbm %s1170_s7, %s666_s14 }
  0x4c   : > { %682 = vmatpush3.bf16.msra.mxu0 %v770_v1  ;;  %688 = vmatpush3.bf16.msra.mxu1 %v771_v4  ;;  %v650_v10 = vld [vmem:[%s1165_s2] ss:$0 sm:$0xff]  ;;  %v777_v18 = vld [vmem:[%s1168_s5 + $0x8] sm:$0xff]   ;;  %v653_v20 = vld [vmem:[#allocation5] ss:$0 sm:$0xff]  ;;  %s560_s15 = sshll.u32 %s306_s29, 4  ;;  %s561_s15 = int_to_ptr.vmem [resolvable:$true] %s560_s15 }
  0x4d   : > { %699 = vmatprep.subr.bf16.mxu0 %v909_v0  ;;  %689 = vmatprep.subr.bf16.mxu1 %v909_v0  ;;  %v778_v19 = vld [vmem:[%s1168_s5] sm:$0xff]   ;;  %s547_s9 = scalar_lea.sflag [#allocation4], %s1071_s19  ;;  %s837_s11 = scalar_lea.vmem %s561_s15, 128 }
  0x4e   : > { %v659_v28 = vld [vmem:[%s1169_s6] ss:$0 sm:$0xff]  ;;  %p838_p9 = scmp.ne.s32.totalorder %s561_s15, %s837_s11  ;;  %p1190_p11 = scmp.ne.s32.totalorder %s1184_s22, 0 }
  0x4f   : > { %684 = vmatmul.mubr.msk.bf16.vlgmr.msra.gmra.mxu0 %vm325_vm1, %v309_v3  ;;  %s911_s30 = smov [#allocation7]  }
  0x50   : > { %707 = vmatprep.mubr.msk.bf16.mxu0 %vm910_vm0, %v909_v0  ;;  %690 = vmatpush3.bf16.msra.mxu1 %v772_v5  ;;  %p839_p13 = pnand %p838_p9, %p1190_p11  ;;  %s841_s28 = sshll.u32 %s911_s30, 4  ;;  %s842_s28 = int_to_ptr.vmem [resolvable:$false] %s841_s28 }
  0x51   : > { %691 = vmatprep.subr.bf16.mxu1 %v909_v0  ;;  %700 = vmatpush3.bf16.msra.mxu0 %v775_v8  ;;  %s843_s20 = scalar_lea.vmem %s842_s28, 256  ;;  %p844_p1 = scmp.lt.s32.totalorder %s561_s15, %s842_s28 }
  0x52   : > { %701 = vmatprep.subr.bf16.mxu0 %v909_v0  ;;  %p840_p10 = pneg %p839_p13  ;;  %p845_p2 = scmp.lt.s32.totalorder %s843_s20, %s837_s11 }
  0x54   : > { %692 = vmatpush3.bf16.msra.mxu1 %v773_v6  ;;  %p846_p0 = por %p845_p2, %p844_p1 }
  0x55   : > { %693 = vmatprep.subr.bf16.mxu1 %v909_v0  ;;  %702 = vmatpush3.bf16.msra.mxu0 %v776_v9 }
  0x56   : > { %703 = vmatprep.subr.bf16.mxu0 %v909_v0  ;;  %p847_p3 = pnand %p846_p0, %p840_p10 }
  0x58   : > { %694 = vmatpush3.bf16.msra.mxu1 %v774_v7 }
  0x59   : > { %704 = vmatpush3.bf16.msra.mxu0 %v777_v18 }
  0x5a   : > { %705 = vmatprep.subr.bf16.mxu0 %v909_v0 }
  0x5d   : > { %706 = vmatpush3.bf16.msra.mxu0 %v778_v19 }
 0x10f   : > { %v363_v11 = vpop.f32.mrf.mxu0 }
 0x110   : > { %v364_v12 = vadd.f32 %v650_v10, %v363_v11 }
 0x111   : > { %v685_v13 = vpop.f32.mrf.mxu0 }
 0x112   : > { %v369_v14 = vmax.f32 %v364_v12, 0.0 }
 0x113   : > { %v366_v15 = vpop.f32.mrf.mxu0 }
 0x114   : > { %v370_v16 = vpack.c.bf16 %v369_v14, %v369_v14 }
 0x115   : > { %v686_v17 = vpop.f32.mrf.mxu0 }
 0x116   : > { %696 = vmatmul.mubr.msk.bf16.vlgmr.msra.gmra.mxu1 %vm410_vm2, %v370_v16 }
 0x1d6   : > { %v448_v21 = vpop.f32.mrf.mxu1 }
 0x1d7   : > { %v449_v22 = vadd.f32 %v653_v20, %v448_v21 }
 0x1d8   : > { %v697_v23 = vpop.f32.mrf.mxu1 }
 0x1d9   : > { %v454_v24 = vmax.f32 %v449_v22, 0.0 }
 0x1da   : > { %v451_v25 = vpop.f32.mrf.mxu1 }
 0x1db   : > { %v455_v26 = vpack.c.bf16 %v454_v24, %v454_v24 }
 0x1dc   : > { %v698_v27 = vpop.f32.mrf.mxu1 }
 0x1dd   : > { %708 = vmatmul.mubr.msk.bf16.vlgmr.msra.gmra.mxu0 %vm410_vm2, %v455_v26 }
 0x29d   : > { %v532_v29 = vpop.f32.mrf.mxu0 }
 0x29e   : > { %v533_v30 = vadd.f32 %v659_v28, %v532_v29 }
 0x29f   : > { %v709_v31 = vpop.f32.mrf.mxu0 }
 0x2a0   : > { %v538_v32 = vsub.f32 0.0, %v533_v30 }
 0x2a1   : > { %v535_v33 = vpop.f32.mrf.mxu0 }
 0x2a2   : > { %v539_v34 = vmul.f32 1.442695, %v538_v32 }
 0x2a3   : > { %v710_v35 = vpop.f32.mrf.mxu0 }
 0x2a4   : > { %779 = vpow2.f32 %v539_v34 }
 0x2b1   : > { %v780_v36 = vpop.eup %779 }
 0x2b2   : > { %v541_v37 = vadd.f32 1.0, %v780_v36 }
 0x2b4   : > { %781 = vrcp.f32 %v541_v37 }
 0x2c1   : > { %v782_v38 = vpop.eup %781 }
 0x2c2   : > { %545 = vst.msk [vmem:[%s306_s29] sm:$0xff] %vm544_vm3, %v782_v38 }
 0x2c3   : > { %850 = shalt.err (!%p847_p3)
}
 0x2c4   : > { %s851_s16 = scalar_lea.hbm %s1126_s21, 128  ;;  %s855_s18 = scalar_lea.hbm %s1170_s7, 256 }
 0x2c5   : > { %p852_p12 = scmp.ne.s32.totalorder %s1126_s21, %s851_s16  ;;  %p856_p4 = scmp.lt.s32.totalorder %s1126_s21, %s1170_s7 }
 0x2c6   : > { %p857_p6 = scmp.lt.s32.totalorder %s855_s18, %s851_s16 }
 0x2c7   : > { %p853_p5 = pnand %p852_p12, %p1190_p11 }
 0x2c8   : > { %p858_p8 = por %p857_p6, %p856_p4 }
 0x2c9   : > { %p854_p7 = pneg %p853_p5 }
 0x2cb   : > { %p859_p9 = pnand %p858_p8, %p854_p7 }
 0x2cd   : > { %862 = shalt.err (!%p859_p9)
}
 0x2ce   : > { %717 = dma.vmem_to_hbm [thread:$0]  (%p1190_p11), %s561_s15, 128, %s1126_s21, %s547_s9  }
 0x2cf PF: > { %s572_s14 = sand.u32 1, %s893_s24   ;;  %p1191_p13 = scmp.ne.s32.totalorder %s1177_s8, 0 }
 0x2d0   : > { %p1192_p10 = scmp.ge.s32.totalorder %s905_s27, 2  ;;  %s573_s29 = scalar_lea.sflag [#allocation4], %s572_s14 }
 0x2d2   : > { %p728_p1 = pnand %p1192_p10, %p1191_p13 }
 0x2d4   : > { %p729_p2 = pneg %p728_p1 }
 0x2d6   : > { %888 = dma.done.wait (%p729_p2), %s573_s29, 128  }
 0x2d7   : > { %890 = vsyncadd (%p729_p2), %s573_s29, 4294967168  ;;  %s1193_s23 = sld [smem:[#allocation11_spill]]  ;;  %p21_p0 = scmp.ge.s32.totalorder %s1000_s12, 4  }
 0x2d8   : > { %s1194_s24 = smov %s897_s25  ;;  %s1195_s25 = smov %s901_s26 }
 0x2d9   : > { %s1197_s27 = smov %s1000_s12  ;;  %23 = sbr.rel (!%p21_p0) target bundleno = 8 (0x8), region = 97 }
 0x2dd   : > { %s1196_s26 = smov %s1193_s23 }
 0x2de   :  { %578 = vsyncpa [#allocation3], 1 }
 0x2df   :  { %580 = vsyncpa [#allocation3 + $0x1], 1 }
 0x2e0   :  { %581 = vsyncpa [#allocation6], 1 }
 0x2e1   :  { %582 = vsyncpa [#allocation4], 1 }
 0x2e2   :  { %584 = vsyncpa [#allocation4 + $0x1], 1 }

</bundles_post_ra>
